<compile_context>
chip_gen: v7x
topology: tpu7x:2x2x1
jax: 0.10.0
libtpu: 0.0.40
codegen_flags: <defaults>
</compile_context>

<pallas_src>
import functools

import jax
import jax.numpy as jnp
from jax import lax
from jax.experimental import pallas as pl
from jax.experimental.pallas import tpu as pltpu

PROB_MIN = 0.25    # prob_min -> initial transmission probability
NORMALISE = True   # module default
_RAND_BITS = 24    # Bernoulli compare precision (24-bit uniform integers)


def _round_up(n, m):
    return -(-n // m) * m


def _int_threshold(probs):
    """Integer threshold t such that  uniform_24bit < t  <=>  Bernoulli(prob)."""
    probs = jnp.asarray(probs, jnp.float32)
    return jnp.clip(jnp.round(probs * (1 << _RAND_BITS)),
                    0, 1 << _RAND_BITS).astype(jnp.int32)


def _draw_bits(key, shape):
    """24-bit uniform random integers in [0, 2**24), stored as int32."""
    return (jax.random.bits(key, shape, dtype=jnp.uint32) >> 8).astype(jnp.int32)


def _pad2(a, rows, cols):
    return jnp.pad(a, ((0, rows - a.shape[0]), (0, cols - a.shape[1])))


def _ddc_mlp_kernel(thr_ref, invp_ref,                    # SMEM scalars, one per layer
                    x_ref, w1_ref, r1_ref, b1_ref,        # layer 1 operands
                    w2_ref, r2_ref, b2_ref,               # layer 2 operands
                    o_ref, *, normalise):
    """Fused 2-layer DropConnect MLP: o = relu(x @ W1eff^T + b1) @ W2eff^T + b2."""

    def sampled_weight(w_ref, r_ref, layer):
        # Bernoulli(prob) mask via integer compare against an SMEM threshold.
        keep = r_ref[...] < thr_ref[layer]
        w = w_ref[...]
        if normalise:
            w = w * invp_ref[layer]          # w / prob  (robust: 0 where dropped)
        return jnp.where(keep, w, 0.0)

    # Contract the last dim of both operands: (B, Fin) . (Fout, Fin) -> (B, Fout).
    # Equivalent to x @ W^T, but the MXU consumes W in its natural layout
    # (no XLU transpose / layout copy of the weight tile).
    dnums = (((1,), (1,)), ((), ()))

    w1_eff = sampled_weight(w1_ref, r1_ref, 0)
    h = lax.dot_general(x_ref[...].astype(jnp.bfloat16),
                        w1_eff.astype(jnp.bfloat16),
                        dimension_numbers=dnums,
                        preferred_element_type=jnp.float32)
    h = jnp.maximum(h + b1_ref[...], 0.0)    # bias + ReLU; h never leaves VMEM

    w2_eff = sampled_weight(w2_ref, r2_ref, 1)
    y = lax.dot_general(h.astype(jnp.bfloat16),
                        w2_eff.astype(jnp.bfloat16),
                        dimension_numbers=dnums,
                        preferred_element_type=jnp.float32)
    o_ref[...] = (y + b2_ref[...]).astype(o_ref.dtype)


def ddc_mlp_forward(x, w1, b1, w2, b2, key, *,
                    prob1=PROB_MIN, prob2=PROB_MIN, normalise=NORMALISE):
    """DynamicDropConnect forward over a 2-layer MLP, fused in one pallas_call."""
    B, Fin = x.shape
    H, Fin_w1 = w1.shape
    Fout, H_w2 = w2.shape
    assert Fin == Fin_w1 and H == H_w2
    assert b1.shape == (1, H) and b2.shape == (1, Fout)

    # Pad to TPU-friendly shapes: 8 sublanes on batch, 128 lanes on feature dims
    # (lane-dense stores, fully occupied MXU tiles).  Padding is zero, so padded
    # weights/activations contribute nothing; the result is sliced afterwards.
    Bp, Finp = _round_up(B, 8), _round_up(Fin, 128)
    Hp, Foutp = _round_up(H, 128), _round_up(Fout, 128)

    xp = _pad2(x.astype(jnp.float32), Bp, Finp)
    w1p = _pad2(w1.astype(jnp.float32), Hp, Finp)
    b1p = _pad2(b1.astype(jnp.float32), 1, Hp)
    w2p = _pad2(w2.astype(jnp.float32), Foutp, Hp)
    b2p = _pad2(b2.astype(jnp.float32), 1, Foutp)

    k1, k2 = jax.random.split(key)
    r1 = _draw_bits(k1, (Hp, Finp))
    r2 = _draw_bits(k2, (Foutp, Hp))

    probs = jnp.asarray([prob1, prob2], jnp.float32)
    thr = _int_threshold(probs)                                     # (2,) int32
    invp = jnp.where(probs > 0, 1.0 / probs, 0.0).astype(jnp.float32)  # (2,) f32

    kernel = functools.partial(_ddc_mlp_kernel, normalise=normalise)
    smem = pl.BlockSpec(memory_space=pltpu.MemorySpace.SMEM)

    out = pl.pallas_call(
        kernel,
        out_shape=jax.ShapeDtypeStruct((Bp, Foutp), jnp.float32),
        in_specs=[
            smem,                                        # thresholds  (2,) int32
            smem,                                        # 1/prob      (2,) float32
            pl.BlockSpec((Bp, Finp), lambda: (0, 0)),    # x
            pl.BlockSpec((Hp, Finp), lambda: (0, 0)),    # weight1_raw
            pl.BlockSpec((Hp, Finp), lambda: (0, 0)),    # random words, layer 1
            pl.BlockSpec((1, Hp), lambda: (0, 0)),       # bias1
            pl.BlockSpec((Foutp, Hp), lambda: (0, 0)),   # weight2_raw
            pl.BlockSpec((Foutp, Hp), lambda: (0, 0)),   # random words, layer 2
            pl.BlockSpec((1, Foutp), lambda: (0, 0)),    # bias2
        ],
        out_specs=pl.BlockSpec((Bp, Foutp), lambda: (0, 0)),
    )(thr, invp, xp, w1p, r1, b1p, w2p, r2, b2p)

    return out[:B, :Fout]


def _reference_forward(x, w1, b1, w2, b2, key, *,
                       prob1=PROB_MIN, prob2=PROB_MIN, normalise=NORMALISE):
    """Pure-JAX replica of the DropConnect forward, using the identical random draws."""
    H, Fin = w1.shape
    Fout, _ = w2.shape
    Hp, Finp = _round_up(H, 128), _round_up(Fin, 128)
    Foutp = _round_up(Fout, 128)

    k1, k2 = jax.random.split(key)
    r1 = _draw_bits(k1, (Hp, Finp))[:H, :Fin]
    r2 = _draw_bits(k2, (Foutp, Hp))[:Fout, :H]

    def eff(w, r, prob):
        keep = r < _int_threshold(prob)
        wn = w / prob if normalise else w
        return jnp.where(keep, wn, 0.0)

    h = jnp.maximum(x @ eff(w1, r1, prob1).T + b1, 0.0)
    return h @ eff(w2, r2, prob2).T + b2


if __name__ == "__main__":
    key = jax.random.PRNGKey(0)
    k_x, k_w1, k_b1, k_w2, k_b2, k_mask = jax.random.split(key, 6)

    batch, in_features, hidden, out_features = 8, 32, 64, 16

    x = jax.random.normal(k_x, (batch, in_features), dtype=jnp.float32)

    # Deterministic "weight_raw" parameters; "weight_prob" buffers are the
    # module-default uniform prob_min (passed as per-layer scalars).
    w1 = jax.random.normal(k_w1, (hidden, in_features), dtype=jnp.float32) * 0.1
    b1 = jax.random.normal(k_b1, (1, hidden), dtype=jnp.float32) * 0.01
    w2 = jax.random.normal(k_w2, (out_features, hidden), dtype=jnp.float32) * 0.1
    b2 = jax.random.normal(k_b2, (1, out_features), dtype=jnp.float32) * 0.01

    y = ddc_mlp_forward(x, w1, b1, w2, b2, k_mask)
    y = jax.block_until_ready(y)

    assert y.shape == (batch, out_features)
    assert bool(jnp.all(jnp.isfinite(y)))

    # Correctness check vs. a pure-JAX reference with the same Bernoulli draws
    # (tolerance covers the bf16-input / f32-accumulation matmul).
    y_ref = _reference_forward(x, w1, b1, w2, b2, k_mask)
    assert bool(jnp.allclose(y, y_ref, atol=5e-2, rtol=5e-2)), \
        float(jnp.max(jnp.abs(y - y_ref)))

    print("KERNEL_OK")
</pallas_src>

<mosaic_0001>
module attributes {stable_mosaic.version = 11 : i64} {
  func.func @_ddc_mlp_kernel(%arg0: memref<2xi32, #tpu.memory_space<smem>>, %arg1: memref<2xf32, #tpu.memory_space<smem>>, %arg2: memref<8x128xf32, #tpu.memory_space<vmem>>, %arg3: memref<128x128xf32, #tpu.memory_space<vmem>>, %arg4: memref<128x128xi32, #tpu.memory_space<vmem>>, %arg5: memref<1x128xf32, #tpu.memory_space<vmem>>, %arg6: memref<128x128xf32, #tpu.memory_space<vmem>>, %arg7: memref<128x128xi32, #tpu.memory_space<vmem>>, %arg8: memref<1x128xf32, #tpu.memory_space<vmem>>, %arg9: memref<8x128xf32, #tpu.memory_space<vmem>>) attributes {dimension_semantics = [], scalar_prefetch = 0 : i64, scratch_operands = 0 : i64, tpu.core_type = #tpu.core_type<tc>} {
    %c0 = arith.constant 0 : index
    %c0_0 = arith.constant 0 : index
    %0 = vector.load %arg4[%c0, %c0_0] : memref<128x128xi32, #tpu.memory_space<vmem>>, vector<128x128xi32>
    %c0_1 = arith.constant 0 : index
    %1 = memref.load %arg0[%c0_1] : memref<2xi32, #tpu.memory_space<smem>>
    %2 = vector.broadcast %1 : i32 to vector<128x128xi32>
    %3 = arith.cmpi slt, %0, %2 : vector<128x128xi32>
    %c0_2 = arith.constant 0 : index
    %c0_3 = arith.constant 0 : index
    %4 = vector.load %arg3[%c0_2, %c0_3] : memref<128x128xf32, #tpu.memory_space<vmem>>, vector<128x128xf32>
    %c0_4 = arith.constant 0 : index
    %5 = memref.load %arg1[%c0_4] : memref<2xf32, #tpu.memory_space<smem>>
    %6 = vector.broadcast %5 : f32 to vector<128x128xf32>
    %7 = arith.mulf %4, %6 : vector<128x128xf32>
    %cst = arith.constant 0.000000e+00 : f32
    %8 = vector.broadcast %cst : f32 to vector<128x128xf32>
    %9 = arith.select %3, %7, %8 : vector<128x128xi1>, vector<128x128xf32>
    %c0_5 = arith.constant 0 : index
    %c0_6 = arith.constant 0 : index
    %10 = vector.load %arg2[%c0_5, %c0_6] : memref<8x128xf32, #tpu.memory_space<vmem>>, vector<8x128xf32>
    %11 = arith.truncf %10 : vector<8x128xf32> to vector<8x128xbf16>
    %12 = arith.truncf %9 : vector<128x128xf32> to vector<128x128xbf16>
    %cst_7 = arith.constant dense<0.000000e+00> : vector<8x128xf32>
    %13 = tpu.matmul %11, %12, %cst_7 {dimension_numbers = #tpu.dot_dimension_numbers<[1], [1], [0], [0], [0, 0, 1, 0], [], []>} : vector<8x128xbf16>, vector<128x128xbf16>, vector<8x128xf32> -> vector<8x128xf32>
    %c0_8 = arith.constant 0 : index
    %c0_9 = arith.constant 0 : index
    %14 = vector.load %arg5[%c0_8, %c0_9] : memref<1x128xf32, #tpu.memory_space<vmem>>, vector<1x128xf32>
    %15 = vector.broadcast %14 : vector<1x128xf32> to vector<8x128xf32>
    %16 = arith.addf %13, %15 : vector<8x128xf32>
    %cst_10 = arith.constant 0.000000e+00 : f32
    %17 = vector.broadcast %cst_10 : f32 to vector<8x128xf32>
    %18 = arith.maximumf %16, %17 : vector<8x128xf32>
    %c0_11 = arith.constant 0 : index
    %c0_12 = arith.constant 0 : index
    %19 = vector.load %arg7[%c0_11, %c0_12] : memref<128x128xi32, #tpu.memory_space<vmem>>, vector<128x128xi32>
    %c1 = arith.constant 1 : index
    %20 = memref.load %arg0[%c1] : memref<2xi32, #tpu.memory_space<smem>>
    %21 = vector.broadcast %20 : i32 to vector<128x128xi32>
    %22 = arith.cmpi slt, %19, %21 : vector<128x128xi32>
    %c0_13 = arith.constant 0 : index
    %c0_14 = arith.constant 0 : index
    %23 = vector.load %arg6[%c0_13, %c0_14] : memref<128x128xf32, #tpu.memory_space<vmem>>, vector<128x128xf32>
    %c1_15 = arith.constant 1 : index
    %24 = memref.load %arg1[%c1_15] : memref<2xf32, #tpu.memory_space<smem>>
    %25 = vector.broadcast %24 : f32 to vector<128x128xf32>
    %26 = arith.mulf %23, %25 : vector<128x128xf32>
    %cst_16 = arith.constant 0.000000e+00 : f32
    %27 = vector.broadcast %cst_16 : f32 to vector<128x128xf32>
    %28 = arith.select %22, %26, %27 : vector<128x128xi1>, vector<128x128xf32>
    %29 = arith.truncf %18 : vector<8x128xf32> to vector<8x128xbf16>
    %30 = arith.truncf %28 : vector<128x128xf32> to vector<128x128xbf16>
    %cst_17 = arith.constant dense<0.000000e+00> : vector<8x128xf32>
    %31 = tpu.matmul %29, %30, %cst_17 {dimension_numbers = #tpu.dot_dimension_numbers<[1], [1], [0], [0], [0, 0, 1, 0], [], []>} : vector<8x128xbf16>, vector<128x128xbf16>, vector<8x128xf32> -> vector<8x128xf32>
    %c0_18 = arith.constant 0 : index
    %c0_19 = arith.constant 0 : index
    %32 = vector.load %arg8[%c0_18, %c0_19] : memref<1x128xf32, #tpu.memory_space<vmem>>, vector<1x128xf32>
    %33 = vector.broadcast %32 : vector<1x128xf32> to vector<8x128xf32>
    %34 = arith.addf %31, %33 : vector<8x128xf32>
    %c0_20 = arith.constant 0 : index
    %c0_21 = arith.constant 0 : index
    %35 = vector.load %arg9[%c0_20, %c0_21] : memref<8x128xf32, #tpu.memory_space<vmem>>, vector<8x128xf32>
    tpu.vector_store %arg9[%c0_20, %c0_21], %34 {strides = array<i32>} : memref<8x128xf32, #tpu.memory_space<vmem>>, vector<8x128xf32>,
    return
  }
}

</mosaic_0001>

<bundles_post_ra>
// kernel: tpu_custom_call.1
= control target key start
LH: loop header
LB: loop body
LE: loop exit
PB: predicated region body
PF: predicated region fallthrough
CT: control target
= control target key end

     0   :  { %14 = vsyncpa [#allocation5], 0  ;;  %s977_s0 = inlined_call_operand.hbm [shape: s32[2], index: 0, kind: input, shape index: {}]   ;;  %s978_s1 = inlined_call_operand.vmem [shape: f32[2], index: 1, kind: input, shape index: {}]   ;;  %s979_s2 = inlined_call_operand.hbm [shape: f32[8,128], index: 2, kind: input, shape index: {}]   ;;  %s980_s3 = inlined_call_operand.hbm [shape: f32[128,128], index: 3, kind: input, shape index: {}]   ;;  %s981_s4 = inlined_call_operand.hbm [shape: s32[128,128], index: 4, kind: input, shape index: {}]   ;;  %s982_s5 = inlined_call_operand.vmem [shape: f32[1,128], index: 5, kind: input, shape index: {}]   ;;  %s983_s6 = inlined_call_operand.hbm [shape: f32[128,128], index: 6, kind: input, shape index: {}]   ;;  %s984_s7 = inlined_call_operand.hbm [shape: s32[128,128], index: 7, kind: input, shape index: {}]   ;;  %s985_s8 = inlined_call_operand.vmem [shape: f32[1,128], index: 8, kind: input, shape index: {}]   ;;  %s986_s9 = inlined_call_operand.hbm [shape: f32[8,128], index: 9, kind: output, shape index: {}]  }
   0x1   :  { %15 = vsyncpa [#allocation6], 0 }
   0x2   :  { %16 = vsyncpa [#allocation3], 0 }
   0x3   :  { %17 = vsyncpa [#allocation10], 0 }
   0x4   :  { %18 = vsyncpa [#allocation13], 0 }
   0x5   :  { %19 = vsyncpa [#allocation4], 0  ;;  %s713_s30 = smov [#allocation9]   ;;  %s547_s13 = scalar_lea.hbm %s980_s3, 2048 }
   0x6   :  { %s53_s10 = sshll.u32 %s713_s30, 4  ;;  %p548_p0 = scmp.ne.s32.totalorder %s980_s3, %s547_s13  ;;  %s54_s10 = int_to_ptr.vmem [resolvable:$true] %s53_s10 }
   0x7   :  { %p551_p1 = scmp.lt.u32.totalorder %s547_s13, %s980_s3 }
   0x9   :  { %p553_p2 = pnand %p551_p1, %p548_p0 }
   0xb   :  { %556 = shalt.err (!%p553_p2)
}
   0xc   :  { %s557_s18 = scalar_lea.vmem %s54_s10, 2048  ;;  %p562_p4 = scmp.lt.s32.totalorder %s54_s10, %s54_s10 }
   0xd   :  { %p558_p3 = scmp.ne.s32.totalorder %s54_s10, %s557_s18  ;;  %p563_p5 = scmp.lt.s32.totalorder %s557_s18, %s557_s18 }
   0xf   :  { %p564_p6 = por %p563_p5, %p562_p4 }
  0x11   :  { %p565_p7 = pnand %p564_p6, %p558_p3 }
  0x13   :  { %568 = shalt.err (!%p565_p7)
}
  0x14   :  { %s714_s19 = smov 128   ;;  %s715_s20 = smov 8  }
  0x15   :  { %59 = dma.hbm_to_vmem [thread:$0]  %s980_s3, 2048, %s54_s10, [#allocation10], %s714_s19, %s714_s19, %s715_s20  }
  0x16   :  { %s716_s23 = smov [#allocation12]   ;;  %s34_s27 = sshll.u32 %s978_s1, 4  ;;  %s35_s27 = int_to_ptr.vmem [resolvable:$true] %s34_s27 }
  0x17   :  { %s79_s24 = sshll.u32 %s716_s23, 4  ;;  %s569_s30 = scalar_lea.hbm %s983_s6, 2048  ;;  %s80_s24 = int_to_ptr.vmem [resolvable:$true] %s79_s24 }
  0x18   :  { %p570_p8 = scmp.ne.s32.totalorder %s983_s6, %s569_s30  ;;  %p573_p9 = scmp.lt.u32.totalorder %s569_s30, %s983_s6 }
  0x1a   :  { %p575_p10 = pnand %p573_p9, %p570_p8 }
  0x1c   :  { %578 = shalt.err (!%p575_p10)
}
  0x1d   :  { %s579_s3 = scalar_lea.vmem %s80_s24, 2048  ;;  %p584_p12 = scmp.lt.s32.totalorder %s80_s24, %s80_s24 }
  0x1e   :  { %p580_p11 = scmp.ne.s32.totalorder %s80_s24, %s579_s3  ;;  %p585_p13 = scmp.lt.s32.totalorder %s579_s3, %s579_s3 }
  0x20   :  { %p586_p0 = por %p585_p13, %p584_p12 }
  0x22   :  { %p587_p1 = pnand %p586_p0, %p580_p11 }
  0x24   :  { %590 = shalt.err (!%p587_p1)
}
  0x25   :  { %85 = dma.hbm_to_vmem [thread:$0]  %s983_s6, 2048, %s80_s24, [#allocation13], %s714_s19, %s714_s19, %s715_s20  }
  0x26   :  { %s591_s17 = scalar_lea.hbm %s977_s0, 16 }
  0x27   :  { %p592_p2 = scmp.ne.s32.totalorder %s977_s0, %s591_s17  ;;  %p595_p3 = scmp.lt.u32.totalorder %s591_s17, %s977_s0 }
  0x29   :  { %p597_p4 = pnand %p595_p3, %p592_p2 }
  0x2b   :  { %600 = shalt.err (!%p597_p4)
}
  0x2c   :  { %s717_s25 = smov [#allocation2]   ;;  %s601_s6 = scalar_lea.vmem %s35_s27, 16 }
  0x2d   :  { %27 = dma.hbm_to_smem %s977_s0, 16, %s717_s25, [#allocation5]  }
  0x2e   :  { %p602_p5 = scmp.ne.s32.totalorder %s35_s27, %s601_s6  ;;  %p606_p6 = scmp.lt.s32.totalorder %s35_s27, %s35_s27 }
  0x2f   :  { %p607_p7 = scmp.lt.s32.totalorder %s601_s6, %s601_s6 }
  0x31   :  { %p608_p8 = por %p607_p7, %p606_p6 }
  0x33   :  { %p609_p9 = pnand %p608_p8, %p602_p5 }
  0x35   :  { %612 = shalt.err (!%p609_p9)
}
  0x36   :  { %s718_s24 = smov [#allocation7]   ;;  %s719_s29 = smov [#allocation8]  }
  0x37   :  { %37 = dma.vmem_to_smem %s35_s27, 16, %s718_s24, [#allocation6]  }
  0x38   :  { %s44_s30 = sshll.u32 %s719_s29, 4  ;;  %s720_s11 = smov [#allocation11]   ;;  %s45_s30 = int_to_ptr.vmem [resolvable:$true] %s44_s30 }
  0x39   :  { %s65_s12 = sshll.u32 %s720_s11, 4  ;;  %s613_s0 = scalar_lea.hbm %s979_s2, 128  ;;  %s820_s12 = int_to_ptr.vmem [resolvable:$true] %s65_s12 }
  0x3a   :  { %p614_p10 = scmp.ne.s32.totalorder %s979_s2, %s613_s0  ;;  %p617_p11 = scmp.lt.u32.totalorder %s613_s0, %s979_s2 }
  0x3c   :  { %p619_p12 = pnand %p617_p11, %p614_p10 }
  0x3e   :  { %622 = shalt.err (!%p619_p12)
}
  0x3f   :  { %s623_s27 = scalar_lea.vmem %s45_s30, 128  ;;  %p628_p0 = scmp.lt.s32.totalorder %s45_s30, %s45_s30 }
  0x40   :  { %p624_p13 = scmp.ne.s32.totalorder %s45_s30, %s623_s27  ;;  %p629_p1 = scmp.lt.s32.totalorder %s623_s27, %s623_s27 }
  0x42   :  { %p630_p2 = por %p629_p1, %p628_p0 }
  0x44   :  { %p631_p3 = pnand %p630_p2, %p624_p13 }
  0x46   :  { %634 = shalt.err (!%p631_p3)
}
  0x47   :  { %47 = dma.hbm_to_vmem [thread:$0]  %s979_s2, 128, %s45_s30, [#allocation3]  }
  0x48   :  { %s635_s22 = scalar_lea.hbm %s981_s4, 2048 }
  0x49   :  { %p636_p4 = scmp.ne.s32.totalorder %s981_s4, %s635_s22  ;;  %p639_p5 = scmp.lt.u32.totalorder %s635_s22, %s981_s4 }
  0x4b   :  { %p641_p6 = pnand %p639_p5, %p636_p4 }
  0x4d   :  { %644 = shalt.err (!%p641_p6)
}
  0x4e   :  { %s645_s6 = scalar_lea.vmem %s820_s12, 2048  ;;  %p650_p8 = scmp.lt.s32.totalorder %s820_s12, %s820_s12 }
  0x4f   :  { %p646_p7 = scmp.ne.s32.totalorder %s820_s12, %s645_s6  ;;  %p651_p9 = scmp.lt.s32.totalorder %s645_s6, %s645_s6 }
  0x51   :  { %p652_p10 = por %p651_p9, %p650_p8 }
  0x53   :  { %p653_p11 = pnand %p652_p10, %p646_p7 }
  0x55   :  { %656 = shalt.err (!%p653_p11)
}
  0x56   :  { %71 = dma.hbm_to_vmem [thread:$0]  %s981_s4, 2048, %s820_s12, [#allocation10], %s714_s19, %s714_s19, %s715_s20  }
  0x57   :  { %s721_s29 = smov [#allocation14]   ;;  %s657_s14 = scalar_lea.hbm %s984_s7, 2048 }
  0x58   :  { %s91_s30 = sshll.u32 %s721_s29, 4  ;;  %p658_p12 = scmp.ne.s32.totalorder %s984_s7, %s657_s14  ;;  %s92_s30 = int_to_ptr.vmem [resolvable:$true] %s91_s30 }
  0x59   :  { %p661_p13 = scmp.lt.u32.totalorder %s657_s14, %s984_s7 }
  0x5b   :  { %p663_p0 = pnand %p661_p13, %p658_p12 }
  0x5d   :  { %666 = shalt.err (!%p663_p0)
}
  0x5e   :  { %s667_s15 = scalar_lea.vmem %s92_s30, 2048  ;;  %p672_p2 = scmp.lt.s32.totalorder %s92_s30, %s92_s30 }
  0x5f   :  { %p668_p1 = scmp.ne.s32.totalorder %s92_s30, %s667_s15  ;;  %p673_p3 = scmp.lt.s32.totalorder %s667_s15, %s667_s15 }
  0x61   :  { %p674_p4 = por %p673_p3, %p672_p2 }
  0x63   :  { %p675_p5 = pnand %p674_p4, %p668_p1 }
  0x65   :  { %678 = shalt.err (!%p675_p5)
}
  0x66   :  { %97 = dma.hbm_to_vmem [thread:$0]  %s984_s7, 2048, %s92_s30, [#allocation13], %s714_s19, %s714_s19, %s715_s20  }
  0x67   :  { %701 = dma.done.wait [#allocation5], 16  }
  0x68   :  { %702 = vsyncadd [#allocation5], 4294967280 }
  0x69   :  { %703 = dma.done.wait [#allocation6], 16  }
  0x6a   :  { %704 = vsyncadd [#allocation6], 4294967280 }
  0x6b   :  { %705 = dma.done.wait [#allocation3], 128  }
  0x6c   :  { %706 = vsyncadd [#allocation3], 4294967168 }
  0x6d   :  { %707 = dma.done.wait [#allocation10], 4096  }
  0x6e   :  { %708 = vsyncadd [#allocation10], 4294963200 }
  0x6f   :  { %709 = dma.done.wait [#allocation13], 4096  }
  0x70   :  { %710 = vsyncadd [#allocation13], 4294963200 }
  0x71   :  { %121 = sfence }
  0x72   :  { %s139_s27 = sld [smem:[#allocation2]]  ;;  %v722_v0 = vmov 0.0   ;;  %vm723_vm0 = vmmov 0   ;;  %v123_v1 = vld [vmem:[#allocation11] sm:$0xff]  ;;  %v124_v2 = vld [vmem:[#allocation11 + $0x8] sm:$0xff]  ;;  %v159_v9 = vld [vmem:[#allocation9 + $0x10] sm:$0xff] }
  0x73   :  { %495 = vmatprep.subr.bf16.mxu0 %v722_v0  ;;  %s173_s16 = sld [smem:[#allocation7]]  ;;  %515 = vmatprep.subr.bf16.mxu1 %v722_v0  ;;  %v157_v3 = vld [vmem:[#allocation9] sm:$0xff]  ;;  %v158_v4 = vld [vmem:[#allocation9 + $0x8] sm:$0xff]  ;;  %v160_v10 = vld [vmem:[#allocation9 + $0x18] sm:$0xff]  ;;  %s450_s7 = sld [smem:[#allocation2 + $0x1]] }
  0x74   :  { %511 = vmatprep.mubr.msk.bf16.mxu0 %vm723_vm0, %v722_v0  ;;  %531 = vmatprep.mubr.msk.bf16.mxu1 %vm723_vm0, %v722_v0  ;;  %s451_s19 = sld [smem:[#allocation7 + $0x1]]  ;;  %v125_v12 = vld [vmem:[#allocation11 + $0x10] sm:$0xff]  ;;  %v126_v13 = vld [vmem:[#allocation11 + $0x18] sm:$0xff]  ;;  %v265_v16 = vld [vmem:[#allocation14] sm:$0xff]  ;;  %s724_s22 = smov [#allocation15]  }
  0x75   :  { %v266_v17 = vld [vmem:[#allocation14 + $0x8] sm:$0xff]  ;;  %v299_v18 = vld [vmem:[#allocation12] sm:$0xff]  ;;  %v301_v31 = vld [vmem:[#allocation12 + $0x10] sm:$0xff]  ;;  %s412_s23 = sshll.u32 %s724_s22, 4  ;;  %s413_s23 = int_to_ptr.vmem [resolvable:$true] %s412_s23 }
  0x76   :  { %v300_v20 = vld [vmem:[#allocation12 + $0x8] sm:$0xff]  ;;  %v161_v21 = vld [vmem:[#allocation9 + $0x20] sm:$0xff]  ;;  %v302_v32 = vld [vmem:[#allocation12 + $0x18] sm:$0xff]  ;;  %p684_p7 = scmp.lt.s32.totalorder %s413_s23, %s413_s23 }
  0x77   :  { %v162_v22 = vld [vmem:[#allocation9 + $0x28] sm:$0xff]  ;;  %v127_v26 = vld [vmem:[#allocation11 + $0x20] sm:$0xff]  ;;  %v267_v34 = vld [vmem:[#allocation14 + $0x10] sm:$0xff] }
  0x78   :  { %v873_v5 = vstv %s139_s27  ;;  %v128_v27 = vld [vmem:[#allocation11 + $0x28] sm:$0xff]  ;;  %v268_v35 = vld [vmem:[#allocation14 + $0x18] sm:$0xff]  ;;  %v163_v39 = vld [vmem:[#allocation9 + $0x30] sm:$0xff] }
  0x79   :  { %vm141_vm1 = vcmp.lt.s32.totalorder %v123_v1, %v873_v5  ;;  %vm142_vm2 = vcmp.lt.s32.totalorder %v124_v2, %v873_v5  ;;  %v877_v6 = vstv %s173_s16  ;;  %vm143_vm4 = vcmp.lt.s32.totalorder %v125_v12, %v873_v5  ;;  %v164_v40 = vld [vmem:[#allocation9 + $0x38] sm:$0xff]  ;;  %v129_v41 = vld [vmem:[#allocation11 + $0x30] sm:$0xff]  ;;  %v303_v46 = vld [vmem:[#allocation12 + $0x20] sm:$0xff] }
  0x7a   :  { %v175_v7 = vmul.f32 %v877_v6, %v157_v3  ;;  %v176_v8 = vmul.f32 %v877_v6, %v158_v4  ;;  %vm426_vm3 = vmpackc.low %vm142_vm2, %vm141_vm1  ;;  %v177_v14 = vmul.f32 %v877_v6, %v159_v9  ;;  %v178_v15 = vmul.f32 %v877_v6, %v160_v10  ;;  %v130_v42 = vld [vmem:[#allocation11 + $0x38] sm:$0xff]  ;;  %v304_v47 = vld [vmem:[#allocation12 + $0x28] sm:$0xff] }
  0x7b   :  { %vm144_vm5 = vcmp.lt.s32.totalorder %v126_v13, %v873_v5  ;;  %v886_v23 = vstv %s450_s7  ;;  %v888_v24 = vstv %s451_s19  ;;  %v179_v29 = vmul.f32 %v877_v6, %v161_v21  ;;  %v269_v48 = vld [vmem:[#allocation14 + $0x20] sm:$0xff]  ;;  %v270_v49 = vld [vmem:[#allocation14 + $0x28] sm:$0xff]  ;;  %v305_v60 = vld [vmem:[#allocation12 + $0x30] sm:$0xff] }
  0x7c   :  { %v427_v11 = vpack.c.bf16 %v176_v8, %v175_v7  ;;  %v430_v19 = vpack.c.bf16 %v178_v15, %v177_v14  ;;  %vm429_vm6 = vmpackc.low %vm144_vm5, %vm143_vm4  ;;  %vm283_vm7 = vcmp.lt.s32.totalorder %v265_v16, %v886_v23  ;;  %vm284_vm8 = vcmp.lt.s32.totalorder %v266_v17, %v886_v23  ;;  %v165_v53 = vld [vmem:[#allocation9 + $0x40] sm:$0xff]  ;;  %v166_v54 = vld [vmem:[#allocation9 + $0x48] sm:$0xff] }
  0x7d   :  { %v317_v25 = vmul.f32 %v888_v24, %v299_v18  ;;  %v318_v28 = vmul.f32 %v888_v24, %v300_v20  ;;  %v180_v30 = vmul.f32 %v877_v6, %v162_v22  ;;  %vm453_vm9 = vmpackc.low %vm284_vm8, %vm283_vm7  ;;  %vm145_vm10 = vcmp.lt.s32.totalorder %v127_v26, %v873_v5  ;;  %v131_v55 = vld [vmem:[#allocation11 + $0x40] sm:$0xff]  ;;  %v132_v56 = vld [vmem:[#allocation11 + $0x48] sm:$0xff] }
  0x7e   :  { %496 = vmatpush3.bf16.xpose.msk.msra.mxu0 %vm426_vm3, %v427_v11  ;;  %vm146_vm11 = vcmp.lt.s32.totalorder %v128_v27, %v873_v5  ;;  %v319_v36 = vmul.f32 %v888_v24, %v301_v31  ;;  %v320_v37 = vmul.f32 %v888_v24, %v302_v32  ;;  %vm285_vm13 = vcmp.lt.s32.totalorder %v267_v34, %v886_v23  ;;  %v306_v61 = vld [vmem:[#allocation12 + $0x38] sm:$0xff]  ;;  %v271_v62 = vld [vmem:[#allocation14 + $0x30] sm:$0xff]  ;;  %v307_v13 = vld [vmem:[#allocation12 + $0x40] sm:$0xff] }
  0x7f   :  { %497 = vmatprep.subr.bf16.mxu0 %v722_v0  ;;  %v454_v33 = vpack.c.bf16 %v318_v28, %v317_v25  ;;  %v433_v38 = vpack.c.bf16 %v180_v30, %v179_v29  ;;  %vm432_vm12 = vmpackc.low %vm146_vm11, %vm145_vm10  ;;  %vm286_vm14 = vcmp.lt.s32.totalorder %v268_v35, %v886_v23  ;;  %v181_v44 = vmul.f32 %v877_v6, %v163_v39  ;;  %v272_v63 = vld [vmem:[#allocation14 + $0x38] sm:$0xff]  ;;  %v167_v4 = vld [vmem:[#allocation9 + $0x50] sm:$0xff] }
  0x80   :  { %v457_v43 = vpack.c.bf16 %v320_v37, %v319_v36  ;;  %v182_v45 = vmul.f32 %v877_v6, %v164_v40  ;;  %vm456_vm15 = vmpackc.low %vm286_vm14, %vm285_vm13  ;;  %vm147_vm0 = vcmp.lt.s32.totalorder %v129_v41, %v873_v5  ;;  %vm148_vm1 = vcmp.lt.s32.totalorder %v130_v42, %v873_v5  ;;  %v168_v7 = vld [vmem:[#allocation9 + $0x58] sm:$0xff]  ;;  %v133_v8 = vld [vmem:[#allocation11 + $0x50] sm:$0xff] }
  0x81   :  { %516 = vmatpush3.bf16.xpose.msk.msra.mxu1 %vm453_vm9, %v454_v33  ;;  %v321_v50 = vmul.f32 %v888_v24, %v303_v46  ;;  %v322_v51 = vmul.f32 %v888_v24, %v304_v47  ;;  %vm435_vm2 = vmpackc.low %vm148_vm1, %vm147_vm0  ;;  %vm287_vm3 = vcmp.lt.s32.totalorder %v269_v48, %v886_v23  ;;  %vm288_vm4 = vcmp.lt.s32.totalorder %v270_v49, %v886_v23  ;;  %v134_v9 = vld [vmem:[#allocation11 + $0x58] sm:$0xff]  ;;  %v308_v14 = vld [vmem:[#allocation12 + $0x48] sm:$0xff] }
  0x82   :  { %517 = vmatprep.subr.bf16.mxu1 %v722_v0  ;;  %v436_v52 = vpack.c.bf16 %v182_v45, %v181_v44  ;;  %v183_v58 = vmul.f32 %v877_v6, %v165_v53  ;;  %v184_v59 = vmul.f32 %v877_v6, %v166_v54  ;;  %vm459_vm5 = vmpackc.low %vm288_vm4, %vm287_vm3  ;;  %vm150_vm7 = vcmp.lt.s32.totalorder %v132_v56, %v873_v5  ;;  %v273_v15 = vld [vmem:[#allocation14 + $0x40] sm:$0xff]  ;;  %v274_v16 = vld [vmem:[#allocation14 + $0x48] sm:$0xff] }
  0x83   :  { %v460_v57 = vpack.c.bf16 %v322_v51, %v321_v50  ;;  %v323_v1 = vmul.f32 %v888_v24, %v305_v60  ;;  %v324_v2 = vmul.f32 %v888_v24, %v306_v61  ;;  %vm289_vm9 = vcmp.lt.s32.totalorder %v271_v62, %v886_v23  ;;  %v169_v20 = vld [vmem:[#allocation9 + $0x60] sm:$0xff]  ;;  %v170_v21 = vld [vmem:[#allocation9 + $0x68] sm:$0xff]  ;;  %v309_v29 = vld [vmem:[#allocation12 + $0x50] sm:$0xff] }
  0x84   :  { %v439_v3 = vpack.c.bf16 %v184_v59, %v183_v58  ;;  %vm290_vm10 = vcmp.lt.s32.totalorder %v272_v63, %v886_v23  ;;  %v185_v11 = vmul.f32 %v877_v6, %v167_v4  ;;  %v186_v12 = vmul.f32 %v877_v6, %v168_v7  ;;  %v135_v22 = vld [vmem:[#allocation11 + $0x60] sm:$0xff]  ;;  %v136_v25 = vld [vmem:[#allocation11 + $0x68] sm:$0xff]  ;;  %v310_v30 = vld [vmem:[#allocation12 + $0x58] sm:$0xff] }
  0x85   :  { %v463_v10 = vpack.c.bf16 %v324_v2, %v323_v1  ;;  %vm462_vm11 = vmpackc.low %vm290_vm10, %vm289_vm9  ;;  %vm152_vm13 = vcmp.lt.s32.totalorder %v134_v9, %v873_v5  ;;  %v325_v17 = vmul.f32 %v888_v24, %v307_v13  ;;  %v326_v18 = vmul.f32 %v888_v24, %v308_v14  ;;  %v275_v31 = vld [vmem:[#allocation14 + $0x50] sm:$0xff]  ;;  %v276_v32 = vld [vmem:[#allocation14 + $0x58] sm:$0xff] }
  0x86   :  { %498 = vmatpush3.bf16.xpose.msk.msra.mxu0 %vm429_vm6, %v430_v19  ;;  %vm149_vm6 = vcmp.lt.s32.totalorder %v131_v55, %v873_v5  ;;  %v442_v19 = vpack.c.bf16 %v186_v12, %v185_v11  ;;  %vm292_vm0 = vcmp.lt.s32.totalorder %v274_v16, %v886_v23  ;;  %v187_v27 = vmul.f32 %v877_v6, %v169_v20  ;;  %v171_v36 = vld [vmem:[#allocation9 + $0x70] sm:$0xff]  ;;  %v172_v37 = vld [vmem:[#allocation9 + $0x78] sm:$0xff]  ;;  %v312_v44 = vld [vmem:[#allocation12 + $0x68] sm:$0xff] }
  0x87   :  { %499 = vmatprep.subr.bf16.mxu0 %v722_v0  ;;  %vm438_vm8 = vmpackc.low %vm150_vm7, %vm149_vm6  ;;  %v466_v26 = vpack.c.bf16 %v326_v18, %v325_v17  ;;  %v188_v28 = vmul.f32 %v877_v6, %v170_v21  ;;  %vm154_vm3 = vcmp.lt.s32.totalorder %v136_v25, %v873_v5  ;;  %v327_v33 = vmul.f32 %v888_v24, %v309_v29  ;;  %v138_v39 = vld [vmem:[#allocation11 + $0x78] sm:$0xff]  ;;  %v277_v45 = vld [vmem:[#allocation14 + $0x60] sm:$0xff] }
  0x88   :  { %v328_v34 = vmul.f32 %v888_v24, %v310_v30  ;;  %vm294_vm6 = vcmp.lt.s32.totalorder %v276_v32, %v886_v23  ;;  %v189_v41 = vmul.f32 %v877_v6, %v171_v36  ;;  %v190_v42 = vmul.f32 %v877_v6, %v172_v37  ;;  %v278_v46 = vld [vmem:[#allocation14 + $0x68] sm:$0xff]  ;;  %v207_v50 = vld [vmem:[#allocation8] sm:$0xff]  ;;  %v313_v51 = vld [vmem:[#allocation12 + $0x70] sm:$0xff] }
  0x89   :  { %518 = vmatpush3.bf16.xpose.msk.msra.mxu1 %vm456_vm15, %v457_v43  ;;  %vm291_vm15 = vcmp.lt.s32.totalorder %v273_v15, %v886_v23  ;;  %v445_v35 = vpack.c.bf16 %v188_v28, %v187_v27  ;;  %v311_v43 = vld [vmem:[#allocation12 + $0x60] sm:$0xff]  ;;  %vm156_vm9 = vcmp.lt.s32.totalorder %v138_v39, %v873_v5  ;;  %v330_v48 = vmul.f32 %v888_v24, %v312_v44  ;;  %v279_v55 = vld [vmem:[#allocation14 + $0x70] sm:$0xff]  ;;  %v280_v56 = vld [vmem:[#allocation14 + $0x78] sm:$0xff] }
  0x8a   :  { %519 = vmatprep.subr.bf16.mxu1 %v722_v0  ;;  %vm465_vm1 = vmpackc.low %vm292_vm0, %vm291_vm15  ;;  %v469_v40 = vpack.c.bf16 %v328_v34, %v327_v33  ;;  %v329_v47 = vmul.f32 %v888_v24, %v311_v43  ;;  %v448_v49 = vpack.c.bf16 %v190_v42, %v189_v41  ;;  %v331_v53 = vmul.f32 %v888_v24, %v313_v51  ;;  %v452_v1 = vld [vmem:[%s985_s8] ss:$0 sm:$0xff] }
  0x8b   :  { %vm298_vm15 = vcmp.lt.s32.totalorder %v280_v56, %v886_v23 }
  0x8c   :  { %v472_v6 = vpack.c.bf16 %v330_v48, %v329_v47 }
  0x8e   :  { %500 = vmatpush3.bf16.xpose.msk.msra.mxu0 %vm432_vm12, %v433_v38  ;;  %vm151_vm12 = vcmp.lt.s32.totalorder %v133_v8, %v873_v5  ;;  %v137_v38 = vld [vmem:[#allocation11 + $0x70] sm:$0xff] }
  0x8f   :  { %501 = vmatprep.subr.bf16.mxu0 %v722_v0  ;;  %vm441_vm14 = vmpackc.low %vm152_vm13, %vm151_vm12  ;;  %vm296_vm12 = vcmp.lt.s32.totalorder %v278_v46, %v886_v23 }
  0x91   :  { %520 = vmatpush3.bf16.xpose.msk.msra.mxu1 %vm459_vm5, %v460_v57  ;;  %vm293_vm5 = vcmp.lt.s32.totalorder %v275_v31, %v886_v23 }
  0x92   :  { %521 = vmatprep.subr.bf16.mxu1 %v722_v0  ;;  %vm468_vm7 = vmpackc.low %vm294_vm6, %vm293_vm5 }
  0x96   :  { %502 = vmatpush3.bf16.xpose.msk.msra.mxu0 %vm435_vm2, %v436_v52  ;;  %vm153_vm2 = vcmp.lt.s32.totalorder %v135_v22, %v873_v5  ;;  %v314_v52 = vld [vmem:[#allocation12 + $0x78] sm:$0xff] }
  0x97   :  { %503 = vmatprep.subr.bf16.mxu0 %v722_v0  ;;  %vm444_vm4 = vmpackc.low %vm154_vm3, %vm153_vm2  ;;  %v332_v54 = vmul.f32 %v888_v24, %v314_v52 }
  0x99   :  { %522 = vmatpush3.bf16.xpose.msk.msra.mxu1 %vm462_vm11, %v463_v10  ;;  %vm295_vm11 = vcmp.lt.s32.totalorder %v277_v45, %v886_v23  ;;  %v475_v57 = vpack.c.bf16 %v332_v54, %v331_v53 }
  0x9a   :  { %523 = vmatprep.subr.bf16.mxu1 %v722_v0  ;;  %vm471_vm13 = vmpackc.low %vm296_vm12, %vm295_vm11 }
  0x9e   :  { %504 = vmatpush3.bf16.xpose.msk.msra.mxu0 %vm438_vm8, %v439_v3  ;;  %vm155_vm8 = vcmp.lt.s32.totalorder %v137_v38, %v873_v5  ;;  %v208_v5 = vpack.c.bf16 %v207_v50, %v207_v50 }
  0x9f   :  { %505 = vmatprep.subr.bf16.mxu0 %v722_v0  ;;  %vm447_vm10 = vmpackc.low %vm156_vm9, %vm155_vm8 }
  0xa1   :  { %524 = vmatpush3.bf16.xpose.msk.msra.mxu1 %vm465_vm1, %v466_v26 }
  0xa2   :  { %525 = vmatprep.subr.bf16.mxu1 %v722_v0 }
  0xa6   :  { %506 = vmatpush3.bf16.xpose.msk.msra.mxu0 %vm441_vm14, %v442_v19  ;;  %vm297_vm14 = vcmp.lt.s32.totalorder %v279_v55, %v886_v23 }
  0xa7   :  { %507 = vmatprep.subr.bf16.mxu0 %v722_v0  ;;  %vm474_vm0 = vmpackc.low %vm298_vm15, %vm297_vm14 }
  0xa9   :  { %526 = vmatpush3.bf16.xpose.msk.msra.mxu1 %vm468_vm7, %v469_v40 }
  0xaa   :  { %527 = vmatprep.subr.bf16.mxu1 %v722_v0 }
  0xae   :  { %508 = vmatpush3.bf16.xpose.msk.msra.mxu0 %vm444_vm4, %v445_v35 }
  0xaf   :  { %509 = vmatprep.subr.bf16.mxu0 %v722_v0 }
  0xb1   :  { %528 = vmatpush3.bf16.xpose.msk.msra.mxu1 %vm471_vm13, %v472_v6 }
  0xb2   :  { %529 = vmatprep.subr.bf16.mxu1 %v722_v0  ;;  %v425_v0 = vld [vmem:[%s982_s5] ss:$0 sm:$0xff]  ;;  %s679_s5 = scalar_lea.vmem %s413_s23, 128 }
  0xb3   :  { %p680_p6 = scmp.ne.s32.totalorder %s413_s23, %s679_s5  ;;  %p685_p8 = scmp.lt.s32.totalorder %s679_s5, %s679_s5 }
  0xb5   :  { %p686_p9 = por %p685_p8, %p684_p7 }
  0xb6   :  { %510 = vmatpush3.bf16.xpose.msk.msra.mxu0 %vm447_vm10, %v448_v49 }
  0xb7   :  { %p687_p10 = pnand %p686_p9, %p680_p6 }
  0xb9   :  { %530 = vmatpush3.bf16.xpose.msk.msra.mxu1 %vm474_vm0, %v475_v57 }
  0xbd   :  { %512 = vmatmul.mubr.bf16.vlgmr.msra.gmra.mrb[0].mxu0 %v208_v5 }
 0x190   :  { %v258_v58 = vpop.f32.mrb[0].mxu0 }
 0x191   :  { %v259_v59 = vadd.f32 %v425_v0, %v258_v58  ;;  %v513_v60 = vpop.f32.mrb[1].mxu0 }
 0x192   :  { %v261_v61 = vpop.f32.mrb[2].mxu0 }
 0x193   :  { %v264_v62 = vmax.f32 %v259_v59, 0.0  ;;  %v514_v63 = vpop.f32.mrb[3].mxu0 }
 0x195   :  { %v349_v24 = vpack.c.bf16 %v264_v62, %v264_v62 }
 0x197   :  { %532 = vmatmul.mubr.bf16.vlgmr.msra.gmra.mrb[0].mxu1 %v349_v24 }
 0x26a   :  { %v399_v23 = vpop.f32.mrb[0].mxu1 }
 0x26b   :  { %v400_v2 = vadd.f32 %v452_v1, %v399_v23  ;;  %v533_v3 = vpop.f32.mrb[1].mxu1 }
 0x26c   :  { %v402_v4 = vpop.f32.mrb[2].mxu1 }
 0x26d   :  { %405 = vst [vmem:[#allocation15] sm:$0xff] %v400_v2  ;;  %v534_v7 = vpop.f32.mrb[3].mxu1 }
 0x26e   :  { %690 = shalt.err (!%p687_p10)
}
 0x26f   :  { %s691_s8 = scalar_lea.hbm %s986_s9, 128 }
 0x270   :  { %p692_p11 = scmp.ne.s32.totalorder %s986_s9, %s691_s8  ;;  %p695_p12 = scmp.lt.u32.totalorder %s691_s8, %s986_s9 }
 0x272   :  { %p697_p13 = pnand %p695_p12, %p692_p11 }
 0x274   :  { %700 = shalt.err (!%p697_p13)
}
 0x275   :  { %415 = dma.vmem_to_hbm [thread:$0]  %s413_s23, 128, %s986_s9, [#allocation4]  }
 0x276   :  { %711 = dma.done.wait [#allocation4], 128  }
 0x277   :  { %712 = vsyncadd [#allocation4], 4294967168 }
 0x278   :  { %419 = vsyncpa [#allocation3], 1 }
 0x279   :  { %420 = vsyncpa [#allocation10], 1 }
 0x27a   :  { %421 = vsyncpa [#allocation13], 1 }
 0x27b   :  { %422 = vsyncpa [#allocation4], 1 }
 0x27c   :  { %423 = vsyncpa [#allocation5], 1 }
 0x27d   :  { %424 = vsyncpa [#allocation6], 1 }

</bundles_post_ra>
